<compile_context>
chip_gen: v7x
topology: tpu7x:2x2x1
jax: 0.10.0
libtpu: 0.0.40
codegen_flags: <defaults>
</compile_context>

<pallas_src>
import functools

import jax
import jax.numpy as jnp
import numpy as np
from jax.experimental import pallas as pl
from jax.experimental.pallas import tpu as pltpu


def _round_up(a, b):
    return ((a + b - 1) // b) * b


def _psd_kernel(x_ref, dft_ref, out_ref, *, starts, fpad, nbins, logscale):
    # x_ref:   (TM, ns_pad) f32  -- lane-dense signal tile
    # dft_ref: (FPAD, 2*nbins) f32 -- [cos | sin] basis, pre-scaled by 1/sqrt(NW)
    # out_ref: (TM, nbins) f32
    dft = dft_ref[...]
    tm = out_ref.shape[0]
    acc = jnp.zeros((tm, 2 * nbins), jnp.float32)
    # Static unroll over window starts (NW known at trace time).
    # TODO(synk): for very long signals (large NW) tile the window axis as an
    # "arbitrary" reduction grid axis with a pl.when-initialized accumulator.
    for wi in starts:
        w = x_ref[:, pl.ds(wi, fpad)]                      # (TM, FPAD)
        y = jnp.dot(w, dft, preferred_element_type=jnp.float32)   # (TM, 2*nbins)
        acc = acc + y * y
    # re^2 + im^2, summed over windows; 1/NW already folded into dft scaling.
    psd = acc[:, :nbins] + acc[:, nbins:]
    if logscale:
        psd = jnp.log10(psd)
    out_ref[...] = psd.astype(out_ref.dtype)


def power_spec_dens(x, *, nbins=16, logscale=False):
    """JAX/Pallas equivalent of PowerSpecDens(nbins, logscale).forward(x)."""
    x = jnp.asarray(x, jnp.float32)
    if x.ndim == 1:
        x = x.reshape(1, -1)
    else:
        x = x.reshape(x.shape[0], -1)
    ntrials, ns = x.shape

    nfreqs = 2 * (nbins - 1) + 1
    hop = nfreqs // 2
    assert ns >= nfreqs, "signal too short for a single window"
    starts = tuple(range(0, ns - nfreqs + 1, hop))
    nw = len(starts)

    # Pad contraction dim to a multiple of 8 (extra DFT rows are zero) and pad the
    # sample axis so the last (FPAD-wide) in-kernel slice stays in-bounds; round the
    # lane dim up to 128 for a clean layout.
    fpad = _round_up(nfreqs, 8)
    ns_pad = _round_up(max(ns, starts[-1] + fpad), 128)

    # Trial tile: multiple of 8, capped so the double-buffered x tile stays well
    # under the scoped-VMEM default on all generations (v5e 16 MiB ... v7x 32 MiB).
    tm = min(256, _round_up(ntrials, 8))
    max_tm = max(8, ((8 * 1024 * 1024) // (2 * ns_pad * 4)) // 8 * 8)
    tm = max(8, min(tm, max_tm))
    t_pad = _round_up(ntrials, tm)

    # Zero-pad the signal (padded trials are sliced off; padded samples are only
    # ever multiplied by zeroed DFT rows).
    xp = jnp.pad(x, ((0, t_pad - ntrials), (0, ns_pad - ns)))

    # Deterministic fused DFT basis [cos | sin], rfft sign, 1/NW mean folded in.
    n = np.arange(fpad, dtype=np.float64)
    k = np.arange(nbins, dtype=np.float64)
    ang = -2.0 * np.pi * np.outer(n, k) / float(nfreqs)
    valid = (n < nfreqs)[:, None]
    scale = 1.0 / np.sqrt(float(nw))
    cosm = np.where(valid, np.cos(ang), 0.0) * scale
    sinm = np.where(valid, np.sin(ang), 0.0) * scale
    dft = jnp.asarray(np.concatenate([cosm, sinm], axis=1), jnp.float32)  # (FPAD, 2B)

    grid = (t_pad // tm,)
    out = pl.pallas_call(
        functools.partial(_psd_kernel, starts=starts, fpad=fpad,
                          nbins=nbins, logscale=logscale),
        out_shape=jax.ShapeDtypeStruct((t_pad, nbins), jnp.float32),
        grid=grid,
        in_specs=[
            pl.BlockSpec((tm, ns_pad), lambda i: (i, 0)),
            pl.BlockSpec((fpad, 2 * nbins), lambda i: (0, 0)),
        ],
        out_specs=pl.BlockSpec((tm, nbins), lambda i: (i, 0)),
        compiler_params=pltpu.CompilerParams(
            dimension_semantics=("parallel",),
            vmem_limit_bytes=32 * 1024 * 1024,
        ),
        cost_estimate=pl.CostEstimate(
            flops=2 * t_pad * nw * fpad * (2 * nbins) + 4 * t_pad * nw * nbins,
            transcendentals=t_pad * nbins if logscale else 0,
            bytes_accessed=4 * (t_pad * ns_pad + fpad * 2 * nbins + t_pad * nbins),
        ),
    )(xp, dft)
    return out[:ntrials]


def _reference(x, *, nbins=16, logscale=False):
    """Pure-JAX reference mirroring the PyTorch forward (uses jnp.fft.rfft)."""
    x = jnp.asarray(x, jnp.float32)
    x = x.reshape(1, -1) if x.ndim == 1 else x.reshape(x.shape[0], -1)
    ns = x.shape[1]
    nfreqs = 2 * (nbins - 1) + 1
    hop = nfreqs // 2
    starts = list(range(0, ns - nfreqs + 1, hop))
    wins = jnp.stack([x[:, wi:wi + nfreqs] for wi in starts], axis=1)  # (T, NW, F)
    p = jnp.abs(jnp.fft.rfft(wins, axis=-1)) ** 2
    psd = jnp.mean(p, axis=1)
    if logscale:
        psd = jnp.log10(psd)
    return psd


if __name__ == "__main__":
    nbins = 16                      # -> nfreqs = 31, hop = 15, output bins = 16
    nfreqs = 2 * (nbins - 1) + 1
    hop = nfreqs // 2
    ns = nfreqs + 9 * hop           # 166 samples -> 10 overlapping windows
    ntrials = 6

    key = jax.random.PRNGKey(0)
    x = jax.random.normal(key, (ntrials, ns), dtype=jnp.float32)

    out = jax.block_until_ready(power_spec_dens(x, nbins=nbins, logscale=False))
    assert out.shape == (ntrials, nbins) and out.dtype == jnp.float32
    ref = jax.block_until_ready(_reference(x, nbins=nbins, logscale=False))
    np.testing.assert_allclose(np.asarray(out), np.asarray(ref),
                               rtol=5e-3, atol=1e-2)

    out_l = jax.block_until_ready(power_spec_dens(x, nbins=nbins, logscale=True))
    ref_l = jax.block_until_ready(_reference(x, nbins=nbins, logscale=True))
    np.testing.assert_allclose(np.asarray(out_l), np.asarray(ref_l),
                               rtol=1e-3, atol=1e-2)

    print("KERNEL_OK")
</pallas_src>

<mosaic_0001>
module attributes {stable_mosaic.version = 11 : i64} {
  func.func @_psd_kernel(%arg0: i32, %arg1: memref<8x256xf32, #tpu.memory_space<vmem>>, %arg2: memref<32x32xf32, #tpu.memory_space<vmem>>, %arg3: memref<8x16xf32, #tpu.memory_space<vmem>>) attributes {dimension_semantics = [#tpu.dimension_semantics<parallel>], iteration_bounds = array<i64: 1>, scalar_prefetch = 0 : i64, scratch_operands = 0 : i64, tpu.core_type = #tpu.core_type<tc>, window_params = [{transform_indices = @transform_0, window_bounds = array<i64: 8, 256>}, {pipeline_mode = #tpu.pipeline_mode<synchronous>, transform_indices = @transform_1, window_bounds = array<i64: 32, 32>}, {transform_indices = @transform_2, window_bounds = array<i64: 8, 16>}]} {
    %c0 = arith.constant 0 : index
    %c0_0 = arith.constant 0 : index
    %0 = vector.load %arg2[%c0, %c0_0] : memref<32x32xf32, #tpu.memory_space<vmem>>, vector<32x32xf32>
    %cst = arith.constant 0.000000e+00 : f32
    %1 = vector.broadcast %cst : f32 to vector<8x32xf32>
    %c0_1 = arith.constant 0 : index
    %c0_2 = arith.constant 0 : index
    %2 = vector.load %arg1[%c0_1, %c0_2] : memref<8x256xf32, #tpu.memory_space<vmem>>, vector<8x32xf32>
    %cst_3 = arith.constant dense<0.000000e+00> : vector<8x32xf32>
    %3 = tpu.matmul %2, %0, %cst_3 {dimension_numbers = #tpu.dot_dimension_numbers<[1], [0], [0], [1], [0, 0, 1, 1], [], []>} : vector<8x32xf32>, vector<32x32xf32>, vector<8x32xf32> -> vector<8x32xf32>
    %4 = arith.mulf %3, %3 : vector<8x32xf32>
    %5 = arith.addf %1, %4 : vector<8x32xf32>
    %c0_4 = arith.constant 0 : index
    %c15 = arith.constant 15 : index
    %6 = vector.load %arg1[%c0_4, %c15] : memref<8x256xf32, #tpu.memory_space<vmem>>, vector<8x32xf32>
    %cst_5 = arith.constant dense<0.000000e+00> : vector<8x32xf32>
    %7 = tpu.matmul %6, %0, %cst_5 {dimension_numbers = #tpu.dot_dimension_numbers<[1], [0], [0], [1], [0, 0, 1, 1], [], []>} : vector<8x32xf32>, vector<32x32xf32>, vector<8x32xf32> -> vector<8x32xf32>
    %8 = arith.mulf %7, %7 : vector<8x32xf32>
    %9 = arith.addf %5, %8 : vector<8x32xf32>
    %c0_6 = arith.constant 0 : index
    %c30 = arith.constant 30 : index
    %10 = vector.load %arg1[%c0_6, %c30] : memref<8x256xf32, #tpu.memory_space<vmem>>, vector<8x32xf32>
    %cst_7 = arith.constant dense<0.000000e+00> : vector<8x32xf32>
    %11 = tpu.matmul %10, %0, %cst_7 {dimension_numbers = #tpu.dot_dimension_numbers<[1], [0], [0], [1], [0, 0, 1, 1], [], []>} : vector<8x32xf32>, vector<32x32xf32>, vector<8x32xf32> -> vector<8x32xf32>
    %12 = arith.mulf %11, %11 : vector<8x32xf32>
    %13 = arith.addf %9, %12 : vector<8x32xf32>
    %c0_8 = arith.constant 0 : index
    %c45 = arith.constant 45 : index
    %14 = vector.load %arg1[%c0_8, %c45] : memref<8x256xf32, #tpu.memory_space<vmem>>, vector<8x32xf32>
    %cst_9 = arith.constant dense<0.000000e+00> : vector<8x32xf32>
    %15 = tpu.matmul %14, %0, %cst_9 {dimension_numbers = #tpu.dot_dimension_numbers<[1], [0], [0], [1], [0, 0, 1, 1], [], []>} : vector<8x32xf32>, vector<32x32xf32>, vector<8x32xf32> -> vector<8x32xf32>
    %16 = arith.mulf %15, %15 : vector<8x32xf32>
    %17 = arith.addf %13, %16 : vector<8x32xf32>
    %c0_10 = arith.constant 0 : index
    %c60 = arith.constant 60 : index
    %18 = vector.load %arg1[%c0_10, %c60] : memref<8x256xf32, #tpu.memory_space<vmem>>, vector<8x32xf32>
    %cst_11 = arith.constant dense<0.000000e+00> : vector<8x32xf32>
    %19 = tpu.matmul %18, %0, %cst_11 {dimension_numbers = #tpu.dot_dimension_numbers<[1], [0], [0], [1], [0, 0, 1, 1], [], []>} : vector<8x32xf32>, vector<32x32xf32>, vector<8x32xf32> -> vector<8x32xf32>
    %20 = arith.mulf %19, %19 : vector<8x32xf32>
    %21 = arith.addf %17, %20 : vector<8x32xf32>
    %c0_12 = arith.constant 0 : index
    %c75 = arith.constant 75 : index
    %22 = vector.load %arg1[%c0_12, %c75] : memref<8x256xf32, #tpu.memory_space<vmem>>, vector<8x32xf32>
    %cst_13 = arith.constant dense<0.000000e+00> : vector<8x32xf32>
    %23 = tpu.matmul %22, %0, %cst_13 {dimension_numbers = #tpu.dot_dimension_numbers<[1], [0], [0], [1], [0, 0, 1, 1], [], []>} : vector<8x32xf32>, vector<32x32xf32>, vector<8x32xf32> -> vector<8x32xf32>
    %24 = arith.mulf %23, %23 : vector<8x32xf32>
    %25 = arith.addf %21, %24 : vector<8x32xf32>
    %c0_14 = arith.constant 0 : index
    %c90 = arith.constant 90 : index
    %26 = vector.load %arg1[%c0_14, %c90] : memref<8x256xf32, #tpu.memory_space<vmem>>, vector<8x32xf32>
    %cst_15 = arith.constant dense<0.000000e+00> : vector<8x32xf32>
    %27 = tpu.matmul %26, %0, %cst_15 {dimension_numbers = #tpu.dot_dimension_numbers<[1], [0], [0], [1], [0, 0, 1, 1], [], []>} : vector<8x32xf32>, vector<32x32xf32>, vector<8x32xf32> -> vector<8x32xf32>
    %28 = arith.mulf %27, %27 : vector<8x32xf32>
    %29 = arith.addf %25, %28 : vector<8x32xf32>
    %c0_16 = arith.constant 0 : index
    %c105 = arith.constant 105 : index
    %30 = vector.load %arg1[%c0_16, %c105] : memref<8x256xf32, #tpu.memory_space<vmem>>, vector<8x32xf32>
    %cst_17 = arith.constant dense<0.000000e+00> : vector<8x32xf32>
    %31 = tpu.matmul %30, %0, %cst_17 {dimension_numbers = #tpu.dot_dimension_numbers<[1], [0], [0], [1], [0, 0, 1, 1], [], []>} : vector<8x32xf32>, vector<32x32xf32>, vector<8x32xf32> -> vector<8x32xf32>
    %32 = arith.mulf %31, %31 : vector<8x32xf32>
    %33 = arith.addf %29, %32 : vector<8x32xf32>
    %c0_18 = arith.constant 0 : index
    %c120 = arith.constant 120 : index
    %34 = vector.load %arg1[%c0_18, %c120] : memref<8x256xf32, #tpu.memory_space<vmem>>, vector<8x32xf32>
    %cst_19 = arith.constant dense<0.000000e+00> : vector<8x32xf32>
    %35 = tpu.matmul %34, %0, %cst_19 {dimension_numbers = #tpu.dot_dimension_numbers<[1], [0], [0], [1], [0, 0, 1, 1], [], []>} : vector<8x32xf32>, vector<32x32xf32>, vector<8x32xf32> -> vector<8x32xf32>
    %36 = arith.mulf %35, %35 : vector<8x32xf32>
    %37 = arith.addf %33, %36 : vector<8x32xf32>
    %c0_20 = arith.constant 0 : index
    %c135 = arith.constant 135 : index
    %38 = vector.load %arg1[%c0_20, %c135] : memref<8x256xf32, #tpu.memory_space<vmem>>, vector<8x32xf32>
    %cst_21 = arith.constant dense<0.000000e+00> : vector<8x32xf32>
    %39 = tpu.matmul %38, %0, %cst_21 {dimension_numbers = #tpu.dot_dimension_numbers<[1], [0], [0], [1], [0, 0, 1, 1], [], []>} : vector<8x32xf32>, vector<32x32xf32>, vector<8x32xf32> -> vector<8x32xf32>
    %40 = arith.mulf %39, %39 : vector<8x32xf32>
    %41 = arith.addf %37, %40 : vector<8x32xf32>
    %42 = vector.extract_strided_slice %41 {offsets = [0, 0], sizes = [8, 16], strides = [1, 1]} : vector<8x32xf32> to vector<8x16xf32>
    %43 = vector.extract_strided_slice %41 {offsets = [0, 16], sizes = [8, 16], strides = [1, 1]} : vector<8x32xf32> to vector<8x16xf32>
    %44 = arith.addf %42, %43 : vector<8x16xf32>
    %c0_22 = arith.constant 0 : index
    %c0_23 = arith.constant 0 : index
    %45 = vector.load %arg3[%c0_22, %c0_23] : memref<8x16xf32, #tpu.memory_space<vmem>>, vector<8x16xf32>
    tpu.vector_store %arg3[%c0_22, %c0_23], %44 {strides = array<i32>} : memref<8x16xf32, #tpu.memory_space<vmem>>, vector<8x16xf32>,
    return
  }
  func.func @transform_0(%arg0: i32) -> (i32, i32) {
    %c0_i32 = arith.constant 0 : i32
    %c0_i32_0 = arith.constant 0 : i32
    return %arg0, %c0_i32 : i32, i32
  }
  func.func @transform_1(%arg0: i32) -> (i32, i32) {
    %c0_i32 = arith.constant 0 : i32
    %c0_i32_0 = arith.constant 0 : i32
    %c0_i32_1 = arith.constant 0 : i32
    return %c0_i32, %c0_i32_0 : i32, i32
  }
  func.func @transform_2(%arg0: i32) -> (i32, i32) {
    %c0_i32 = arith.constant 0 : i32
    %c0_i32_0 = arith.constant 0 : i32
    return %arg0, %c0_i32 : i32, i32
  }
}

</mosaic_0001>

<bundles_post_ra>
// kernel: tpu_custom_call.1
= control target key start
LH: loop header
LB: loop body
LE: loop exit
PB: predicated region body
PF: predicated region fallthrough
CT: control target
= control target key end

     0   :  { %7 = vsyncpa [#allocation3], 0  ;;  %s1309_s0 = inlined_call_operand.hbm [shape: f32[8,256], index: 0, kind: input, shape index: {}]   ;;  %s1310_s1 = inlined_call_operand.hbm [shape: f32[32,32], index: 1, kind: input, shape index: {}]   ;;  %s1311_s2 = inlined_call_operand.hbm [shape: f32[8,16], index: 2, kind: output, shape index: {}]  }
   0x1   :  { %8 = vsyncpa [#allocation6], 0 }
   0x2   :  { %9 = vsyncpa [#allocation4], 0  ;;  %s1157_s9 = smov [#allocation2]   ;;  %s1158_s11 = smov [#allocation5]  }
   0x3   :  { %s16_s10 = sshll.u32 %s1157_s9, 4  ;;  %s25_s12 = sshll.u32 %s1158_s11, 4  ;;  %s17_s10 = int_to_ptr.vmem [resolvable:$true] %s16_s10  ;;  %s1189_s12 = int_to_ptr.vmem [resolvable:$true] %s25_s12 }
   0x4   :  { %s1085_s15 = scalar_lea.hbm %s1309_s0, 256 }
   0x5   :  { %p1086_p0 = scmp.ne.s32.totalorder %s1309_s0, %s1085_s15  ;;  %p1089_p1 = scmp.lt.u32.totalorder %s1085_s15, %s1309_s0 }
   0x7   :  { %p1091_p2 = pnand %p1089_p1, %p1086_p0 }
   0x9   :  { %1094 = shalt.err (!%p1091_p2)
}
   0xa   :  { %s1095_s20 = scalar_lea.vmem %s17_s10, 256  ;;  %p1100_p4 = scmp.lt.s32.totalorder %s17_s10, %s17_s10 }
   0xb   :  { %p1096_p3 = scmp.ne.s32.totalorder %s17_s10, %s1095_s20  ;;  %p1101_p5 = scmp.lt.s32.totalorder %s1095_s20, %s1095_s20 }
   0xd   :  { %p1102_p6 = por %p1101_p5, %p1100_p4 }
   0xf   :  { %p1103_p7 = pnand %p1102_p6, %p1096_p3 }
  0x11   :  { %1106 = shalt.err (!%p1103_p7)
}
  0x12   :  { %19 = dma.hbm_to_vmem [thread:$0]  %s1309_s0, 256, %s17_s10, [#allocation3]  }
  0x13   :  { %s1107_s25 = scalar_lea.hbm %s1310_s1, 512 }
  0x14   :  { %p1108_p8 = scmp.ne.s32.totalorder %s1310_s1, %s1107_s25  ;;  %p1111_p9 = scmp.lt.u32.totalorder %s1107_s25, %s1310_s1 }
  0x16   :  { %p1113_p10 = pnand %p1111_p9, %p1108_p8 }
  0x18   :  { %1116 = shalt.err (!%p1113_p10)
}
  0x19   :  { %s1117_s30 = scalar_lea.vmem %s1189_s12, 512  ;;  %p1122_p12 = scmp.lt.s32.totalorder %s1189_s12, %s1189_s12 }
  0x1a   :  { %p1118_p11 = scmp.ne.s32.totalorder %s1189_s12, %s1117_s30  ;;  %p1123_p13 = scmp.lt.s32.totalorder %s1117_s30, %s1117_s30 }
  0x1c   :  { %p1124_p0 = por %p1123_p13, %p1122_p12 }
  0x1e   :  { %p1125_p1 = pnand %p1124_p0, %p1118_p11 }
  0x20   :  { %1128 = shalt.err (!%p1125_p1)
}
  0x21   :  { %s1159_s0 = smov 128   ;;  %s1160_s3 = smov 8  }
  0x22   :  { %31 = dma.hbm_to_vmem [thread:$0]  %s1310_s1, 512, %s1189_s12, [#allocation6], %s1159_s0, %s1159_s0, %s1160_s3  }
  0x23   :  { %1151 = dma.done.wait [#allocation3], 256  }
  0x24   :  { %1152 = vsyncadd [#allocation3], 4294967040 }
  0x25   :  { %1153 = dma.done.wait [#allocation6], 512  }
  0x26   :  { %1154 = vsyncadd [#allocation6], 4294966784  ;;  %v1161_v0 = vmov 0.0|0.0   ;;  %vm1162_vm0 = vmmov 0   ;;  %v1163_v1 = vmov 0.0   ;;  %v42_v2 = vld [vmem:[#allocation2] sm:$0xff] }
  0x27   :  { %1008 = vmatprep.subr.bf16.mxu0 %v1161_v0  ;;  %1014 = vmatprep.subr.bf16.mxu1 %v1161_v0  ;;  %v38_v3 = vld [vmem:[#allocation5] sm:$0xff]  ;;  %s1164_s1 = smov 113   ;;  %s1165_s6 = smov 83   ;;  %v39_v4 = vld [vmem:[#allocation5 + $0x8] sm:$0xff]  ;;  %v40_v5 = vld [vmem:[#allocation5 + $0x10] sm:$0xff]  ;;  %vm43_vm1 = vcmask 261120  }
  0x28   :  { %906 = vmatprep.mubr.msk.f32.mxu0 %vm1162_vm0, %v1163_v1  ;;  %917 = vmatprep.mubr.msk.f32.mxu1 %vm1162_vm0, %v1163_v1  ;;  %v41_v6 = vld [vmem:[#allocation5 + $0x18] sm:$0xff]  ;;  %v1227_v7 = vpack.c.bf16 %v39_v4, %v38_v3  ;;  %s1166_s7 = smov 98   ;;  %s1167_s8 = smov 68   ;;  %vm583_vm2 = vcmask 187392   ;;  %vm663_vm3 = vcmask 64512   ;;  %vm820_vm4 = vcmask 130048  }
  0x29   :  { %119 = vrot.lane.b32.xlu0 %v42_v2, %s1164_s1  ;;  %271 = vrot.lane.b32.xlu1 %v42_v2, %s1165_s6  ;;  %v1230_v8 = vpack.c.bf16 %v41_v6, %v40_v5  ;;  %s1168_s9 = smov 53   ;;  %s1169_s10 = smov 38   ;;  %v576_v9 = vld [vmem:[#allocation2 + $0x8] sm:$0xff] }
  0x2a   :  { %1010 = vmatpush3.bf16.msra.mxu0 %v1227_v7  ;;  %1016 = vmatpush3.bf16.msra.mxu1 %v1227_v7  ;;  %s1170_s11 = smov 23   ;;  %s1171_s12 = smov 121  }
  0x2b   :  { %1011 = vmatprep.subr.bf16.mxu0 %v1161_v0  ;;  %1017 = vmatprep.subr.bf16.mxu1 %v1161_v0  ;;  %s1172_s13 = smov 112   ;;  %s1173_s14 = smov [#allocation7]  }
  0x2c   :  { %s828_s15 = sshll.u32 %s1173_s14, 4  ;;  %s829_s15 = int_to_ptr.vmem [resolvable:$true] %s828_s15 }
  0x2d   :  { %195 = vrot.lane.b32.xlu0 %v42_v2, %s1166_s7  ;;  %347 = vrot.lane.b32.xlu1 %v42_v2, %s1167_s8  ;;  %s1129_s16 = scalar_lea.vmem %s829_s15, 128  ;;  %p1134_p3 = scmp.lt.s32.totalorder %s829_s15, %s829_s15 }
  0x2e   :  { %1013 = vmatpush3.bf16.msra.mxu0 %v1230_v8  ;;  %1019 = vmatpush3.bf16.msra.mxu1 %v1230_v8  ;;  %p1130_p2 = scmp.ne.s32.totalorder %s829_s15, %s1129_s16  ;;  %p1135_p4 = scmp.lt.s32.totalorder %s1129_s16, %s1129_s16 }
  0x2f   :  { %1020 = vmatprep.subr.bf16.mxu0 %v1161_v0  ;;  %1026 = vmatprep.subr.bf16.mxu1 %v1161_v0 }
  0x30   :  { %p1136_p5 = por %p1135_p4, %p1134_p3 }
  0x31   :  { %423 = vrot.lane.b32.xlu0 %v42_v2, %s1168_s9  ;;  %499 = vrot.lane.b32.xlu1 %v42_v2, %s1169_s10 }
  0x32   :  { %907 = vmatmul.mubr.msk.f32.vlgmr.msra.gmra.mrb[0].mxu0 %vm43_vm1, %v42_v2  ;;  %p1137_p6 = pnand %p1136_p5, %p1130_p2 }
  0x33   :  { %1022 = vmatpush3.bf16.msra.mxu0 %v1227_v7  ;;  %928 = vmatprep.mubr.msk.f32.mxu0 %vm1162_vm0, %v1163_v1 }
  0x34   :  { %1023 = vmatprep.subr.bf16.mxu0 %v1161_v0 }
  0x35   :  { %581 = vrot.lane.b32.xlu1 %v576_v9, %s1170_s11  ;;  %579 = vrot.lane.b32.xlu0 %v42_v2, %s1170_s11 }
  0x37   :  { %1025 = vmatpush3.bf16.msra.mxu0 %v1230_v8 }
  0x38   :  { %1032 = vmatprep.subr.bf16.mxu0 %v1161_v0 }
  0x39   :  { %661 = vrot.lane.b32.xlu1 %v576_v9, %s1160_s3  ;;  %659 = vrot.lane.b32.xlu0 %v42_v2, %s1160_s3 }
  0x3d   :  { %739 = vrot.lane.b32.xlu0 %v576_v9, %s1171_s12 }
  0x9b   :  { %v120_v10 = vpop.permute.xlu0 %119  ;;  %v272_v11 = vpop.permute.xlu1 %271 }
  0x9c   :  { %918 = vmatmul.mubr.msk.f32.vlgmr.msra.gmra.mrb[0].mxu1 %vm43_vm1, %v120_v10 }
  0x9d   :  { %1028 = vmatpush3.bf16.msra.mxu1 %v1227_v7  ;;  %939 = vmatprep.mubr.msk.f32.mxu1 %vm1162_vm0, %v1163_v1 }
  0x9e   :  { %1029 = vmatprep.subr.bf16.mxu1 %v1161_v0 }
  0x9f   :  { %v196_v12 = vpop.permute.xlu0 %195  ;;  %v348_v13 = vpop.permute.xlu1 %347 }
  0xa0   :  { %929 = vmatmul.mubr.msk.f32.vlgmr.msra.gmra.mrb[2].mxu0 %vm43_vm1, %v196_v12 }
  0xa1   :  { %1031 = vmatpush3.bf16.msra.mxu1 %v1230_v8  ;;  %1034 = vmatpush3.bf16.msra.mxu0 %v1227_v7 }
  0xa2   :  { %1035 = vmatprep.subr.bf16.mxu0 %v1161_v0  ;;  %1038 = vmatprep.subr.bf16.mxu1 %v1161_v0 }
  0xa3   :  { %950 = vmatprep.mubr.msk.f32.mxu0 %vm1162_vm0, %v1163_v1  ;;  %v500_v14 = vpop.permute.xlu1 %499  ;;  %v424_v15 = vpop.permute.xlu0 %423 }
  0xa4   :  { %940 = vmatmul.mubr.msk.f32.vlgmr.msra.gmra.mrb[2].mxu1 %vm43_vm1, %v272_v11 }
  0xa5   :  { %1037 = vmatpush3.bf16.msra.mxu0 %v1230_v8  ;;  %1040 = vmatpush3.bf16.msra.mxu1 %v1227_v7 }
  0xa6   :  { %1041 = vmatprep.subr.bf16.mxu1 %v1161_v0  ;;  %1044 = vmatprep.subr.bf16.mxu0 %v1161_v0 }
  0xa7   :  { %961 = vmatprep.mubr.msk.f32.mxu1 %vm1162_vm0, %v1163_v1  ;;  %v582_v16 = vpop.permute.xlu1 %581  ;;  %v580_v17 = vpop.permute.xlu0 %579 }
  0xa8   :  { %951 = vmatmul.mubr.msk.f32.vlgmr.msra.gmra.mrb[4].mxu0 %vm43_vm1, %v348_v13  ;;  %v584_v18 = vsel %vm583_vm2, %v580_v17, %v582_v16 }
  0xa9   :  { %1043 = vmatpush3.bf16.msra.mxu1 %v1230_v8  ;;  %1046 = vmatpush3.bf16.msra.mxu0 %v1227_v7 }
  0xaa   :  { %1047 = vmatprep.subr.bf16.mxu0 %v1161_v0  ;;  %1050 = vmatprep.subr.bf16.mxu1 %v1161_v0 }
  0xab   :  { %972 = vmatprep.mubr.msk.f32.mxu0 %vm1162_vm0, %v1163_v1  ;;  %v662_v19 = vpop.permute.xlu1 %661  ;;  %v660_v20 = vpop.permute.xlu0 %659 }
  0xac   :  { %962 = vmatmul.mubr.msk.f32.vlgmr.msra.gmra.mrb[4].mxu1 %vm43_vm1, %v424_v15  ;;  %v664_v21 = vsel %vm663_vm3, %v660_v20, %v662_v19 }
  0xad   :  { %1049 = vmatpush3.bf16.msra.mxu0 %v1230_v8  ;;  %1052 = vmatpush3.bf16.msra.mxu1 %v1227_v7 }
  0xae   :  { %1053 = vmatprep.subr.bf16.mxu1 %v1161_v0  ;;  %1056 = vmatprep.subr.bf16.mxu0 %v1161_v0 }
  0xaf   :  { %983 = vmatprep.mubr.msk.f32.mxu1 %vm1162_vm0, %v1163_v1  ;;  %v740_v22 = vpop.permute.xlu0 %739 }
  0xb0   :  { %973 = vmatmul.mubr.msk.f32.vlgmr.msra.gmra.mrb[6].mxu0 %vm43_vm1, %v500_v14 }
  0xb1   :  { %1055 = vmatpush3.bf16.msra.mxu1 %v1230_v8  ;;  %1058 = vmatpush3.bf16.msra.mxu0 %v1227_v7 }
  0xb2   :  { %1059 = vmatprep.subr.bf16.mxu0 %v1161_v0  ;;  %1062 = vmatprep.subr.bf16.mxu1 %v1161_v0 }
  0xb3   :  { %994 = vmatprep.mubr.msk.f32.mxu0 %vm1162_vm0, %v1163_v1 }
  0xb4   :  { %984 = vmatmul.mubr.msk.f32.vlgmr.msra.gmra.mrb[6].mxu1 %vm43_vm1, %v584_v18 }
  0xb5   :  { %1061 = vmatpush3.bf16.msra.mxu0 %v1230_v8  ;;  %1064 = vmatpush3.bf16.msra.mxu1 %v1227_v7 }
  0xb6   :  { %1065 = vmatprep.subr.bf16.mxu1 %v1161_v0  ;;  %1005 = vmatprep.mubr.msk.f32.mxu1 %vm1162_vm0, %v1163_v1 }
  0xb8   :  { %995 = vmatmul.mubr.msk.f32.vlgmr.msra.gmra.mrb[8].mxu0 %vm43_vm1, %v664_v21 }
  0xb9   :  { %1067 = vmatpush3.bf16.msra.mxu1 %v1230_v8 }
  0xbc   :  { %1006 = vmatmul.mubr.msk.f32.vlgmr.msra.gmra.mrb[8].mxu1 %vm43_vm1, %v740_v22 }
 0x105   :  { %v113_v23 = vpop.f32.mrb[0].mxu0 }
 0x106   :  { %v908_v24 = vpop.f32.mrb[1].mxu0  ;;  %v117_v26 = vmul.f32 %v113_v23, %v113_v23 }
 0x16f   :  { %v189_v25 = vpop.f32.mrb[0].mxu1 }
 0x170   :  { %v193_v27 = vmul.f32 %v189_v25, %v189_v25  ;;  %v919_v28 = vpop.f32.mrb[1].mxu1 }
 0x172   :  { %v194_v29 = vadd.f32 %v193_v27, %v117_v26 }
 0x173   :  { %v265_v30 = vpop.f32.mrb[2].mxu0 }
 0x174   :  { %v269_v31 = vmul.f32 %v265_v30, %v265_v30  ;;  %v930_v32 = vpop.f32.mrb[3].mxu0 }
 0x176   :  { %v270_v33 = vadd.f32 %v269_v31, %v194_v29 }
 0x177   :  { %v341_v34 = vpop.f32.mrb[2].mxu1 }
 0x178   :  { %v345_v35 = vmul.f32 %v341_v34, %v341_v34  ;;  %v941_v36 = vpop.f32.mrb[3].mxu1 }
 0x17a   :  { %v346_v37 = vadd.f32 %v345_v35, %v270_v33 }
 0x17b   :  { %v417_v38 = vpop.f32.mrb[4].mxu0 }
 0x17c   :  { %v421_v39 = vmul.f32 %v417_v38, %v417_v38  ;;  %v952_v40 = vpop.f32.mrb[5].mxu0 }
 0x17e   :  { %v422_v41 = vadd.f32 %v421_v39, %v346_v37 }
 0x17f   :  { %v493_v42 = vpop.f32.mrb[4].mxu1 }
 0x180   :  { %v497_v43 = vmul.f32 %v493_v42, %v493_v42  ;;  %v963_v44 = vpop.f32.mrb[5].mxu1 }
 0x182   :  { %v498_v45 = vadd.f32 %v497_v43, %v422_v41 }
 0x183   :  { %v569_v46 = vpop.f32.mrb[6].mxu0 }
 0x184   :  { %v573_v47 = vmul.f32 %v569_v46, %v569_v46  ;;  %v974_v48 = vpop.f32.mrb[7].mxu0 }
 0x186   :  { %v574_v49 = vadd.f32 %v573_v47, %v498_v45 }
 0x187   :  { %v653_v50 = vpop.f32.mrb[6].mxu1 }
 0x188   :  { %v657_v51 = vmul.f32 %v653_v50, %v653_v50  ;;  %v985_v52 = vpop.f32.mrb[7].mxu1 }
 0x18a   :  { %v658_v53 = vadd.f32 %v657_v51, %v574_v49 }
 0x18b   :  { %v733_v54 = vpop.f32.mrb[8].mxu0 }
 0x18c   :  { %v737_v55 = vmul.f32 %v733_v54, %v733_v54  ;;  %v996_v56 = vpop.f32.mrb[9].mxu0 }
 0x18e   :  { %v738_v57 = vadd.f32 %v737_v55, %v658_v53 }
 0x18f   :  { %v809_v58 = vpop.f32.mrb[8].mxu1 }
 0x190   :  { %v813_v59 = vmul.f32 %v809_v58, %v809_v58  ;;  %v1007_v60 = vpop.f32.mrb[9].mxu1 }
 0x192   :  { %v814_v61 = vadd.f32 %v813_v59, %v738_v57 }
 0x194   :  { %816 = vrot.lane.b32.xlu1 %v814_v61, %s1172_s13 }
 0x206   :  { %v817_v62 = vpop.permute.xlu1 %816 }
 0x207   :  { %v819_v63 = vadd.f32 %v817_v62, %v814_v61 }
 0x209   :  { %821 = vst.msk [vmem:[#allocation7] sm:$0xff] %vm820_vm4, %v819_v63 }
 0x20a   :  { %1140 = shalt.err (!%p1137_p6)
}
 0x20b   :  { %s1141_s19 = scalar_lea.hbm %s1311_s2, 128 }
 0x20c   :  { %p1142_p7 = scmp.ne.s32.totalorder %s1311_s2, %s1141_s19  ;;  %p1145_p8 = scmp.lt.u32.totalorder %s1141_s19, %s1311_s2 }
 0x20e   :  { %p1147_p9 = pnand %p1145_p8, %p1142_p7 }
 0x210   :  { %1150 = shalt.err (!%p1147_p9)
}
 0x211   :  { %831 = dma.vmem_to_hbm [thread:$0]  %s829_s15, 128, %s1311_s2, [#allocation4]  }
 0x212   :  { %1155 = dma.done.wait [#allocation4], 128  }
 0x213   :  { %1156 = vsyncadd [#allocation4], 4294967168 }
 0x214   :  { %835 = vsyncpa [#allocation3], 1 }
 0x215   :  { %836 = vsyncpa [#allocation6], 1 }
 0x216   :  { %837 = vsyncpa [#allocation4], 1 }

</bundles_post_ra>
